<compile_context>
chip_gen: v7x
topology: tpu7x:2x2x1
jax: 0.10.0
libtpu: 0.0.40
codegen_flags: <defaults>
</compile_context>

<pallas_src>
import math
from functools import partial

import jax
import jax.numpy as jnp
from jax.experimental import pallas as pl
from jax.experimental.pallas import tpu as pltpu

_SQRT2_INV = 1.0 / math.sqrt(2.0)
_TM_CAP = 2048  # lane-tile cap (review: 2048-4096); sized against v5e's 16 MiB scoped VMEM.


def _gelu(x):
    return 0.5 * x * (1.0 + jax.lax.erf(x * _SQRT2_INV))


def _round_up(x, m):
    return (x + m - 1) // m * m


def _choose_tile(m, unit=1):
    """Pick (TM, m_pad): TM a multiple of lcm(128, unit); >=2 tiles when enough work (v7x)."""
    base = 128 * unit // math.gcd(128, unit)
    if base > 2 * _TM_CAP:
        return None  # cannot align tiles to example boundaries -> caller falls back to im2col
    cap = max(base, (_TM_CAP // base) * base)
    n_units = -(-m // base)  # ceil(m / base)
    tm = min(cap, (n_units // 2) * base) if n_units >= 2 else base
    return tm, _round_up(max(m, 1), tm)


def _fit_width(a, width):
    if a.shape[1] == width:
        return a
    if a.shape[1] > width:
        return a[:, :width]
    return jnp.pad(a, ((0, 0), (0, width - a.shape[1])))


# --------------------------------------------------------------------------- #
# Kernel: stride-1 "same" conv, no im2col.  Fuses the previous layer's
# per-channel affine (+GELU) into the load, accumulates K shifted dots, and
# emits per-tile BN partials from the f32 accumulator.
# --------------------------------------------------------------------------- #
def _conv_shift_kernel(x_ref, w_ref, sc_ref, sh_ref, y_ref, s1_ref, s2_ref, *,
                       taps, pad, l_in, m_valid, tm,
                       apply_in_affine, apply_in_act):
    # x_ref : (C_in, TM) bf16 tile of previous *raw* output; lane axis = flat (B, L_in),
    #         TM % l_in == 0 so tile boundaries coincide with example boundaries.
    # w_ref : (K, C_out, C_in) bf16.   sc/sh_ref : (C_in, 1) f32 pending input epilogue.
    cin = x_ref.shape[0]
    xf = x_ref[...].astype(jnp.float32)
    if apply_in_affine:                       # previous layer's folded BN / conv bias
        xf = xf * sc_ref[...] + sh_ref[...]
    if apply_in_act:                          # previous layer's GELU
        xf = _gelu(xf)

    # Position of each lane inside its example (tile start is a multiple of l_in).
    j = jax.lax.broadcasted_iota(jnp.int32, (1, tm), 1) % l_in

    acc = jnp.zeros(y_ref.shape, jnp.float32)
    for k in range(taps):                     # K is tiny & static: unrolled taps
        d = k - pad                           # input offset of this tap
        if d == 0:
            xs = xf
        elif d > 0:                           # xs[:, m] = xf[:, m + d], zero fill at tile end
            xs = jnp.concatenate([xf[:, d:], jnp.zeros((cin, d), jnp.float32)], axis=1)
        else:                                 # xs[:, m] = xf[:, m + d], zero fill at tile start
            xs = jnp.concatenate([jnp.zeros((cin, -d), jnp.float32), xf[:, :d]], axis=1)
        valid = jnp.logical_and(j + d >= 0, j + d < l_in)   # virtual conv zero-padding
        xs = jnp.where(valid, xs, 0.0)
        acc = acc + jnp.dot(w_ref[k], xs.astype(jnp.bfloat16),
                            preferred_element_type=jnp.float32)

    y_ref[...] = acc.astype(y_ref.dtype)      # carry raw activation in bf16

    # Exact BN partials on the f32 accumulator; mask the padded lane tail (it holds
    # junk because the fused input epilogue maps raw zeros to gelu(shift) != 0).
    lane = jax.lax.broadcasted_iota(jnp.int32, acc.shape, 1) + pl.program_id(0) * tm
    ym = jnp.where(lane < m_valid, acc, 0.0)
    s1_ref[...] = jnp.sum(ym, axis=1, keepdims=True)[None]
    s2_ref[...] = jnp.sum(ym * ym, axis=1, keepdims=True)[None]


def conv_shift(x_in, w_t, sc, sh, *, taps, pad, l_in, m_valid, tm,
               apply_in_affine, apply_in_act):
    cin, m_pad = x_in.shape
    cout = w_t.shape[1]
    n_t = m_pad // tm
    kernel = partial(_conv_shift_kernel, taps=taps, pad=pad, l_in=l_in,
                     m_valid=m_valid, tm=tm,
                     apply_in_affine=apply_in_affine, apply_in_act=apply_in_act)
    return pl.pallas_call(
        kernel,
        out_shape=(jax.ShapeDtypeStruct((cout, m_pad), jnp.bfloat16),
                   jax.ShapeDtypeStruct((n_t, cout, 1), jnp.float32),
                   jax.ShapeDtypeStruct((n_t, cout, 1), jnp.float32)),
        grid=(n_t,),
        in_specs=[pl.BlockSpec((cin, tm), lambda i: (0, i)),
                  pl.BlockSpec((taps, cout, cin), lambda i: (0, 0, 0)),
                  pl.BlockSpec((cin, 1), lambda i: (0, 0)),
                  pl.BlockSpec((cin, 1), lambda i: (0, 0))],
        out_specs=(pl.BlockSpec((cout, tm), lambda i: (0, i)),
                   pl.BlockSpec((1, cout, 1), lambda i: (i, 0, 0)),
                   pl.BlockSpec((1, cout, 1), lambda i: (i, 0, 0))),
        compiler_params=pltpu.CompilerParams(dimension_semantics=("parallel",)),
    )(x_in, w_t, sc, sh)


# --------------------------------------------------------------------------- #
# Kernel: im2col fallback (stride > 1 / shape-changing conv) as a single GEMM.
# The pending epilogue was already fused into the XLA gather, so the padded tail
# columns are exactly zero and no stats mask is needed.
# --------------------------------------------------------------------------- #
def _conv_im2col_kernel(x_ref, w_ref, y_ref, s1_ref, s2_ref):
    y = jnp.dot(w_ref[...], x_ref[...], preferred_element_type=jnp.float32)  # (C_out, TM)
    y_ref[...] = y.astype(y_ref.dtype)
    s1_ref[...] = jnp.sum(y, axis=1, keepdims=True)[None]
    s2_ref[...] = jnp.sum(y * y, axis=1, keepdims=True)[None]


def conv_im2col(xstack, w2, *, tm):
    kd, m_pad = xstack.shape
    cout = w2.shape[0]
    n_t = m_pad // tm
    return pl.pallas_call(
        _conv_im2col_kernel,
        out_shape=(jax.ShapeDtypeStruct((cout, m_pad), jnp.bfloat16),
                   jax.ShapeDtypeStruct((n_t, cout, 1), jnp.float32),
                   jax.ShapeDtypeStruct((n_t, cout, 1), jnp.float32)),
        grid=(n_t,),
        in_specs=[pl.BlockSpec((kd, tm), lambda i: (0, i)),
                  pl.BlockSpec((cout, kd), lambda i: (0, 0))],
        out_specs=(pl.BlockSpec((cout, tm), lambda i: (0, i)),
                   pl.BlockSpec((1, cout, 1), lambda i: (i, 0, 0)),
                   pl.BlockSpec((1, cout, 1), lambda i: (i, 0, 0))),
        compiler_params=pltpu.CompilerParams(dimension_semantics=("parallel",)),
    )(xstack, w2)


# --------------------------------------------------------------------------- #
# Kernel: final-layer epilogue (folded BN / bias + GELU), lane-dense.
# --------------------------------------------------------------------------- #
def _epilogue_kernel(y_ref, sc_ref, sh_ref, o_ref, *, apply_act):
    y = y_ref[...].astype(jnp.float32) * sc_ref[...] + sh_ref[...]
    if apply_act:
        y = _gelu(y)
    o_ref[...] = y


def epilogue(y_raw, sc, sh, *, tm, apply_act):
    cout, m_pad = y_raw.shape
    n_t = m_pad // tm
    return pl.pallas_call(
        partial(_epilogue_kernel, apply_act=apply_act),
        out_shape=jax.ShapeDtypeStruct((cout, m_pad), jnp.float32),
        grid=(n_t,),
        in_specs=[pl.BlockSpec((cout, tm), lambda i: (0, i)),
                  pl.BlockSpec((cout, 1), lambda i: (0, 0)),
                  pl.BlockSpec((cout, 1), lambda i: (0, 0))],
        out_specs=pl.BlockSpec((cout, tm), lambda i: (0, i)),
        compiler_params=pltpu.CompilerParams(dimension_semantics=("parallel",)),
    )(y_raw, sc, sh)


# --------------------------------------------------------------------------- #
# JAX glue: im2col for the fallback path, parameter init, layer loop.
# --------------------------------------------------------------------------- #
def _build_xstack(x_cbl, kernel_size, stride, padding):
    """x_cbl: (C, B, L) -> (C*K, B*L_out); row index = c*K + k (matches W flatten)."""
    C, B, L = x_cbl.shape
    xp = jnp.pad(x_cbl, ((0, 0), (0, 0), (padding, padding)))
    L_out = (L + 2 * padding - kernel_size) // stride + 1
    starts = jnp.arange(L_out) * stride
    idx = starts[None, :] + jnp.arange(kernel_size)[:, None]   # (K, L_out)
    cols = xp[:, :, idx]                                       # (C, B, K, L_out)
    cols = jnp.transpose(cols, (0, 2, 1, 3))                   # (C, K, B, L_out)
    return cols.reshape(C * kernel_size, B * L_out), L_out


def init_conv1d_params(key, settings):
    """Deterministic parameter init mirroring nn.Conv1d / nn.BatchNorm1d (arrays only)."""
    params = []
    for i, (cin, cout, k, stride, pad) in enumerate(settings):
        kw, kb = jax.random.split(jax.random.fold_in(key, i))
        bound = 1.0 / math.sqrt(cin * k)
        params.append(dict(
            w=jax.random.uniform(kw, (cout, cin, k), jnp.float32, -bound, bound),
            b=jax.random.uniform(kb, (cout,), jnp.float32, -bound, bound),
            gamma=jnp.ones((cout,), jnp.float32),
            beta=jnp.zeros((cout,), jnp.float32)))
    return params


def conv1d_forward(params, x, settings, *, use_bn=True, no_activation_last=False, eps=1e-5):
    """Replicates CONV1D.forward: input (B, C, L) or (B, L); settings is static."""
    if x.ndim == 2:
        x = x[:, None, :]                       # unsqueeze(1)
    B = x.shape[0]
    num_layer = len(settings)

    # Carried state: previous *raw* (pre-BN, pre-activation) conv output, channel-major
    # lane-dense flat (C, m_pad) bf16 (valid columns [0, M) = flattened (B, L)), plus the
    # pending per-channel affine(+GELU) epilogue which is fused into the consumer.
    L_cur = x.shape[2]
    M_cur = B * L_cur
    C_cur = x.shape[1]
    raw = jnp.transpose(x, (1, 0, 2)).reshape(C_cur, M_cur).astype(jnp.bfloat16)
    pend_scale = None
    pend_shift = None
    pend_act = False
    tm_cur = None

    for i, (cin, cout, k, stride, pad) in enumerate(settings):
        p = params[i]
        L_out = (L_cur + 2 * pad - k) // stride + 1
        same_conv = (stride == 1) and (L_out == L_cur)
        tile = _choose_tile(B * L_out, unit=L_cur) if same_conv else None

        if tile is not None:
            # ---- shift path: no im2col; K-tap accumulation in-kernel ---------------
            tm, m_pad = tile
            x_in = _fit_width(raw, m_pad)
            sc = pend_scale if pend_scale is not None else jnp.ones((cin,), jnp.float32)
            sh = pend_shift if pend_shift is not None else jnp.zeros((cin,), jnp.float32)
            w_t = jnp.transpose(p["w"], (2, 0, 1)).astype(jnp.bfloat16)   # (K, C_out, C_in)
            y_raw, s1t, s2t = conv_shift(
                x_in, w_t, sc.reshape(cin, 1), sh.reshape(cin, 1),
                taps=k, pad=pad, l_in=L_cur, m_valid=M_cur, tm=tm,
                apply_in_affine=pend_scale is not None, apply_in_act=pend_act)
            M_new = M_cur
        else:
            # ---- im2col fallback (stride > 1 / shape-changing / unalignable L) -----
            # The pending affine+GELU is fused into the XLA gather; no standalone pass.
            # TODO(synk): a halo-DMA shift kernel for stride-1 layers whose L does not
            # tile cleanly would remove this gather for long sequences too.
            act = raw[:, :M_cur].reshape(C_cur, B, L_cur).astype(jnp.float32)
            if pend_scale is not None:
                act = act * pend_scale[:, None, None] + pend_shift[:, None, None]
            if pend_act:
                act = _gelu(act)
            xstack, L_out = _build_xstack(act, k, stride, pad)
            M_new = B * L_out
            tm, m_pad = _choose_tile(M_new, unit=1)
            xstack = jnp.pad(xstack, ((0, 0), (0, m_pad - M_new))).astype(jnp.bfloat16)
            w2 = p["w"].reshape(cout, cin * k).astype(jnp.bfloat16)
            y_raw, s1t, s2t = conv_im2col(xstack, w2, tm=tm)

        if use_bn:
            # BatchNorm1d training-mode statistics over all (batch, position) columns,
            # assembled from exact per-tile partials (computed pre-bf16-cast).
            s1 = jnp.sum(s1t[:, :, 0], axis=0)
            s2 = jnp.sum(s2t[:, :, 0], axis=0)
            mean = s1 / M_new
            var = jnp.maximum(s2 / M_new - mean * mean, 0.0)       # biased variance
            scale = p["gamma"] * jax.lax.rsqrt(var + eps)
            # Conv bias is not applied in the conv kernels: with BN it is cancelled
            # exactly by the mean subtraction, so the normalized output is unchanged.
            shift = p["beta"] - mean * scale
        else:
            scale = jnp.ones((cout,), jnp.float32)
            shift = p["b"].astype(jnp.float32)                     # conv bias applied downstream

        pend_scale, pend_shift = scale, shift
        pend_act = not (i + 1 == num_layer and no_activation_last)
        raw, L_cur, M_cur, C_cur, tm_cur = y_raw, L_out, M_new, cout, tm

    # Final epilogue: the last pending affine (+GELU) in one small lane-dense pass.
    out_flat = epilogue(raw, pend_scale.reshape(C_cur, 1), pend_shift.reshape(C_cur, 1),
                        tm=tm_cur, apply_act=pend_act)
    out = out_flat[:, :M_cur].reshape(C_cur, B, L_cur)
    out = jnp.transpose(out, (1, 0, 2))                            # back to (B, C, L)
    if out.shape[1] == 1:                                          # x.squeeze(1) semantics
        out = out[:, 0, :]
    return out


# --------------------------------------------------------------------------- #
# Pure-JAX f32 reference (mirrors the PyTorch module) for a tolerance check.
# --------------------------------------------------------------------------- #
def _reference_forward(params, settings, x, *, use_bn=True, no_activation_last=False, eps=1e-5):
    if x.ndim == 2:
        x = x[:, None, :]
    h = x.astype(jnp.float32)
    n = len(settings)
    for i, (cin, cout, k, stride, pad) in enumerate(settings):
        p = params[i]
        h = jax.lax.conv_general_dilated(
            h, p["w"], window_strides=(stride,), padding=[(pad, pad)],
            dimension_numbers=("NCH", "OIH", "NCH"))
        h = h + p["b"][None, :, None]
        if use_bn:
            mean = jnp.mean(h, axis=(0, 2), keepdims=True)
            var = jnp.mean((h - mean) ** 2, axis=(0, 2), keepdims=True)
            h = (h - mean) * jax.lax.rsqrt(var + eps)
            h = h * p["gamma"][None, :, None] + p["beta"][None, :, None]
        if not (i + 1 == n and no_activation_last):
            h = _gelu(h)
    if h.shape[1] == 1:
        h = h[:, 0, :]
    return h


if __name__ == "__main__":
    # settings: list of (in_channels, out_channels, kernel_size, stride, padding)
    settings = [(4, 8, 3, 1, 1), (8, 8, 3, 2, 1)]
    key = jax.random.PRNGKey(0)
    kx, kp = jax.random.split(key)
    x = jax.random.normal(kx, (2, 4, 16), jnp.float32)   # (B, C_in, L), NCL like PyTorch
    params = init_conv1d_params(kp, settings)

    # TODO(synk): BatchNorm running-stat buffer updates (training-mode side effect)
    # are not tracked; they do not affect the forward output in train mode.
    fwd = jax.jit(partial(conv1d_forward, settings=settings,
                          use_bn=True, no_activation_last=False))
    out = jax.block_until_ready(fwd(params, x))
    assert out.shape == (2, 8, 8), out.shape

    # Loose tolerance: GEMM operands and inter-layer activations are carried in bf16.
    ref = _reference_forward(params, settings, x, use_bn=True, no_activation_last=False)
    assert bool(jnp.allclose(out, ref, rtol=0.15, atol=0.15)), \
        float(jnp.max(jnp.abs(out - ref)))

    print("KERNEL_OK")
</pallas_src>

<mosaic_0001>
module attributes {stable_mosaic.version = 11 : i64} {
  func.func @_conv_shift_kernel(%arg0: i32, %arg1: memref<4x128xbf16, #tpu.memory_space<vmem>>, %arg2: memref<3x8x4xbf16, #tpu.memory_space<vmem>>, %arg3: memref<4x1xf32, #tpu.memory_space<vmem>>, %arg4: memref<4x1xf32, #tpu.memory_space<vmem>>, %arg5: memref<8x128xbf16, #tpu.memory_space<vmem>>, %arg6: memref<1x8x1xf32, #tpu.memory_space<vmem>>, %arg7: memref<1x8x1xf32, #tpu.memory_space<vmem>>) attributes {dimension_semantics = [#tpu.dimension_semantics<parallel>], iteration_bounds = array<i64: 1>, scalar_prefetch = 0 : i64, scratch_operands = 0 : i64, tpu.core_type = #tpu.core_type<tc>, window_params = [{transform_indices = @transform_0, window_bounds = array<i64: 4, 128>}, {pipeline_mode = #tpu.pipeline_mode<synchronous>, transform_indices = @transform_1, window_bounds = array<i64: 3, 8, 4>}, {pipeline_mode = #tpu.pipeline_mode<synchronous>, transform_indices = @transform_2, window_bounds = array<i64: 4, 1>}, {pipeline_mode = #tpu.pipeline_mode<synchronous>, transform_indices = @transform_3, window_bounds = array<i64: 4, 1>}, {transform_indices = @transform_4, window_bounds = array<i64: 8, 128>}, {transform_indices = @transform_5, window_bounds = array<i64: 1, 8, 1>}, {transform_indices = @transform_6, window_bounds = array<i64: 1, 8, 1>}]} {
    %c0 = arith.constant 0 : index
    %c0_0 = arith.constant 0 : index
    %0 = vector.load %arg1[%c0, %c0_0] : memref<4x128xbf16, #tpu.memory_space<vmem>>, vector<4x128xbf16>
    %1 = arith.extf %0 : vector<4x128xbf16> to vector<4x128xf32>
    %2 = tpu.iota {dimensions = array<i32: 1>} : vector<1x128xi32>
    %c16_i32 = arith.constant 16 : i32
    %c0_i32 = arith.constant 0 : i32
    %3 = arith.cmpi eq, %c16_i32, %c0_i32 : i32
    %c1_i32 = arith.constant 1 : i32
    %4 = arith.select %3, %c1_i32, %c16_i32 : i32
    %5 = vector.broadcast %4 : i32 to vector<1x128xi32>
    %6 = arith.remsi %2, %5 : vector<1x128xi32>
    %c0_i32_1 = arith.constant 0 : i32
    %7 = vector.broadcast %c0_i32_1 : i32 to vector<1x128xi32>
    %8 = arith.cmpi ne, %6, %7 : vector<1x128xi32>
    %c0_i32_2 = arith.constant 0 : i32
    %9 = vector.broadcast %c0_i32_2 : i32 to vector<1x128xi32>
    %10 = arith.cmpi slt, %6, %9 : vector<1x128xi32>
    %c0_i32_3 = arith.constant 0 : i32
    %11 = arith.cmpi slt, %4, %c0_i32_3 : i32
    %12 = vector.broadcast %11 : i1 to vector<1x128xi1>
    %13 = vector.broadcast %12 : vector<1x128xi1> to vector<1x128xi1>
    %14 = arith.xori %10, %13 : vector<1x128xi1>
    %15 = arith.andi %14, %8 : vector<1x128xi1>
    %16 = vector.broadcast %4 : i32 to vector<1x128xi32>
    %17 = arith.addi %6, %16 : vector<1x128xi32>
    %18 = arith.select %15, %17, %6 : vector<1x128xi1>, vector<1x128xi32>
    %cst = arith.constant 0.000000e+00 : f32
    %19 = vector.broadcast %cst : f32 to vector<8x128xf32>
    %cst_4 = arith.constant 0.000000e+00 : f32
    %20 = vector.broadcast %cst_4 : f32 to vector<4x1xf32>
    %21 = vector.extract_strided_slice %1 {offsets = [0, 0], sizes = [4, 127], strides = [1, 1]} : vector<4x128xf32> to vector<4x127xf32>
    %22 = tpu.concatenate %20, %21 in 1 : vector<4x1xf32>, vector<4x127xf32> -> vector<4x128xf32>
    %c-1_i32 = arith.constant -1 : i32
    %23 = vector.broadcast %c-1_i32 : i32 to vector<1x128xi32>
    %24 = arith.addi %18, %23 : vector<1x128xi32>
    %c0_i32_5 = arith.constant 0 : i32
    %25 = vector.broadcast %c0_i32_5 : i32 to vector<1x128xi32>
    %26 = arith.cmpi sge, %24, %25 : vector<1x128xi32>
    %c-1_i32_6 = arith.constant -1 : i32
    %27 = vector.broadcast %c-1_i32_6 : i32 to vector<1x128xi32>
    %28 = arith.addi %18, %27 : vector<1x128xi32>
    %c16_i32_7 = arith.constant 16 : i32
    %29 = vector.broadcast %c16_i32_7 : i32 to vector<1x128xi32>
    %30 = arith.cmpi slt, %28, %29 : vector<1x128xi32>
    %31 = arith.andi %26, %30 : vector<1x128xi1>
    %cst_8 = arith.constant 0.000000e+00 : f32
    %32 = vector.shape_cast %31 : vector<1x128xi1> to vector<1x128xi1>
    %33 = vector.broadcast %32 : vector<1x128xi1> to vector<4x128xi1>
    %34 = vector.broadcast %cst_8 : f32 to vector<4x128xf32>
    %35 = arith.select %33, %22, %34 : vector<4x128xi1>, vector<4x128xf32>
    %c0_9 = arith.constant 0 : index
    %c0_10 = arith.constant 0 : index
    %c0_11 = arith.constant 0 : index
    %36 = vector.load %arg2[%c0_9, %c0_10, %c0_11] : memref<3x8x4xbf16, #tpu.memory_space<vmem>>, vector<1x8x4xbf16>
    %37 = vector.shape_cast %36 : vector<1x8x4xbf16> to vector<8x4xbf16>
    %38 = arith.truncf %35 : vector<4x128xf32> to vector<4x128xbf16>
    %cst_12 = arith.constant dense<0.000000e+00> : vector<8x128xf32>
    %39 = tpu.matmul %37, %38, %cst_12 {dimension_numbers = #tpu.dot_dimension_numbers<[1], [0], [0], [1], [0, 0, 1, 1], [], []>} : vector<8x4xbf16>, vector<4x128xbf16>, vector<8x128xf32> -> vector<8x128xf32>
    %40 = arith.addf %19, %39 : vector<8x128xf32>
    %c0_i32_13 = arith.constant 0 : i32
    %41 = vector.broadcast %c0_i32_13 : i32 to vector<1x128xi32>
    %42 = arith.addi %18, %41 : vector<1x128xi32>
    %c0_i32_14 = arith.constant 0 : i32
    %43 = vector.broadcast %c0_i32_14 : i32 to vector<1x128xi32>
    %44 = arith.cmpi sge, %42, %43 : vector<1x128xi32>
    %c0_i32_15 = arith.constant 0 : i32
    %45 = vector.broadcast %c0_i32_15 : i32 to vector<1x128xi32>
    %46 = arith.addi %18, %45 : vector<1x128xi32>
    %c16_i32_16 = arith.constant 16 : i32
    %47 = vector.broadcast %c16_i32_16 : i32 to vector<1x128xi32>
    %48 = arith.cmpi slt, %46, %47 : vector<1x128xi32>
    %49 = arith.andi %44, %48 : vector<1x128xi1>
    %cst_17 = arith.constant 0.000000e+00 : f32
    %50 = vector.shape_cast %49 : vector<1x128xi1> to vector<1x128xi1>
    %51 = vector.broadcast %50 : vector<1x128xi1> to vector<4x128xi1>
    %52 = vector.broadcast %cst_17 : f32 to vector<4x128xf32>
    %53 = arith.select %51, %1, %52 : vector<4x128xi1>, vector<4x128xf32>
    %c1 = arith.constant 1 : index
    %c0_18 = arith.constant 0 : index
    %c0_19 = arith.constant 0 : index
    %54 = vector.load %arg2[%c1, %c0_18, %c0_19] : memref<3x8x4xbf16, #tpu.memory_space<vmem>>, vector<1x8x4xbf16>
    %55 = vector.shape_cast %54 : vector<1x8x4xbf16> to vector<8x4xbf16>
    %56 = arith.truncf %53 : vector<4x128xf32> to vector<4x128xbf16>
    %cst_20 = arith.constant dense<0.000000e+00> : vector<8x128xf32>
    %57 = tpu.matmul %55, %56, %cst_20 {dimension_numbers = #tpu.dot_dimension_numbers<[1], [0], [0], [1], [0, 0, 1, 1], [], []>} : vector<8x4xbf16>, vector<4x128xbf16>, vector<8x128xf32> -> vector<8x128xf32>
    %58 = arith.addf %40, %57 : vector<8x128xf32>
    %59 = vector.extract_strided_slice %1 {offsets = [0, 1], sizes = [4, 127], strides = [1, 1]} : vector<4x128xf32> to vector<4x127xf32>
    %cst_21 = arith.constant 0.000000e+00 : f32
    %60 = vector.broadcast %cst_21 : f32 to vector<4x1xf32>
    %61 = tpu.concatenate %59, %60 in 1 : vector<4x127xf32>, vector<4x1xf32> -> vector<4x128xf32>
    %c1_i32_22 = arith.constant 1 : i32
    %62 = vector.broadcast %c1_i32_22 : i32 to vector<1x128xi32>
    %63 = arith.addi %18, %62 : vector<1x128xi32>
    %c0_i32_23 = arith.constant 0 : i32
    %64 = vector.broadcast %c0_i32_23 : i32 to vector<1x128xi32>
    %65 = arith.cmpi sge, %63, %64 : vector<1x128xi32>
    %c1_i32_24 = arith.constant 1 : i32
    %66 = vector.broadcast %c1_i32_24 : i32 to vector<1x128xi32>
    %67 = arith.addi %18, %66 : vector<1x128xi32>
    %c16_i32_25 = arith.constant 16 : i32
    %68 = vector.broadcast %c16_i32_25 : i32 to vector<1x128xi32>
    %69 = arith.cmpi slt, %67, %68 : vector<1x128xi32>
    %70 = arith.andi %65, %69 : vector<1x128xi1>
    %cst_26 = arith.constant 0.000000e+00 : f32
    %71 = vector.shape_cast %70 : vector<1x128xi1> to vector<1x128xi1>
    %72 = vector.broadcast %71 : vector<1x128xi1> to vector<4x128xi1>
    %73 = vector.broadcast %cst_26 : f32 to vector<4x128xf32>
    %74 = arith.select %72, %61, %73 : vector<4x128xi1>, vector<4x128xf32>
    %c2 = arith.constant 2 : index
    %c0_27 = arith.constant 0 : index
    %c0_28 = arith.constant 0 : index
    %75 = vector.load %arg2[%c2, %c0_27, %c0_28] : memref<3x8x4xbf16, #tpu.memory_space<vmem>>, vector<1x8x4xbf16>
    %76 = vector.shape_cast %75 : vector<1x8x4xbf16> to vector<8x4xbf16>
    %77 = arith.truncf %74 : vector<4x128xf32> to vector<4x128xbf16>
    %cst_29 = arith.constant dense<0.000000e+00> : vector<8x128xf32>
    %78 = tpu.matmul %76, %77, %cst_29 {dimension_numbers = #tpu.dot_dimension_numbers<[1], [0], [0], [1], [0, 0, 1, 1], [], []>} : vector<8x4xbf16>, vector<4x128xbf16>, vector<8x128xf32> -> vector<8x128xf32>
    %79 = arith.addf %58, %78 : vector<8x128xf32>
    %80 = arith.truncf %79 : vector<8x128xf32> to vector<8x128xbf16>
    %c0_30 = arith.constant 0 : index
    %c0_31 = arith.constant 0 : index
    %81 = vector.load %arg5[%c0_30, %c0_31] : memref<8x128xbf16, #tpu.memory_space<vmem>>, vector<8x128xbf16>
    tpu.vector_store %arg5[%c0_30, %c0_31], %80 {strides = array<i32>} : memref<8x128xbf16, #tpu.memory_space<vmem>>, vector<8x128xbf16>,
    %82 = tpu.iota {dimensions = array<i32: 1>} : vector<8x128xi32>
    %c128_i32 = arith.constant 128 : i32
    %83 = arith.muli %arg0, %c128_i32 : i32
    %84 = vector.broadcast %83 : i32 to vector<8x128xi32>
    %85 = arith.addi %82, %84 : vector<8x128xi32>
    %c32_i32 = arith.constant 32 : i32
    %86 = vector.broadcast %c32_i32 : i32 to vector<8x128xi32>
    %87 = arith.cmpi slt, %85, %86 : vector<8x128xi32>
    %cst_32 = arith.constant 0.000000e+00 : f32
    %88 = vector.broadcast %cst_32 : f32 to vector<8x128xf32>
    %89 = arith.select %87, %79, %88 : vector<8x128xi1>, vector<8x128xf32>
    %cst_33 = arith.constant dense<0.000000e+00> : vector<8xf32>
    %90 = vector.multi_reduction <add>, %89, %cst_33 [1] : vector<8x128xf32> to vector<8xf32>
    %91 = vector.shape_cast %90 : vector<8xf32> to vector<8x1xf32>
    %92 = vector.shape_cast %91 : vector<8x1xf32> to vector<1x8x1xf32>
    %c0_34 = arith.constant 0 : index
    %c0_35 = arith.constant 0 : index
    %c0_36 = arith.constant 0 : index
    %93 = vector.load %arg6[%c0_34, %c0_35, %c0_36] : memref<1x8x1xf32, #tpu.memory_space<vmem>>, vector<1x8x1xf32>
    tpu.vector_store %arg6[%c0_34, %c0_35, %c0_36], %92 {strides = array<i32>} : memref<1x8x1xf32, #tpu.memory_space<vmem>>, vector<1x8x1xf32>,
    %94 = arith.mulf %89, %89 : vector<8x128xf32>
    %cst_37 = arith.constant dense<0.000000e+00> : vector<8xf32>
    %95 = vector.multi_reduction <add>, %94, %cst_37 [1] : vector<8x128xf32> to vector<8xf32>
    %96 = vector.shape_cast %95 : vector<8xf32> to vector<8x1xf32>
    %97 = vector.shape_cast %96 : vector<8x1xf32> to vector<1x8x1xf32>
    %c0_38 = arith.constant 0 : index
    %c0_39 = arith.constant 0 : index
    %c0_40 = arith.constant 0 : index
    %98 = vector.load %arg7[%c0_38, %c0_39, %c0_40] : memref<1x8x1xf32, #tpu.memory_space<vmem>>, vector<1x8x1xf32>
    tpu.vector_store %arg7[%c0_38, %c0_39, %c0_40], %97 {strides = array<i32>} : memref<1x8x1xf32, #tpu.memory_space<vmem>>, vector<1x8x1xf32>,
    return
  }
  func.func @transform_0(%arg0: i32) -> (i32, i32) {
    %c0_i32 = arith.constant 0 : i32
    %c0_i32_0 = arith.constant 0 : i32
    return %c0_i32, %arg0 : i32, i32
  }
  func.func @transform_1(%arg0: i32) -> (i32, i32, i32) {
    %c0_i32 = arith.constant 0 : i32
    %c0_i32_0 = arith.constant 0 : i32
    %c0_i32_1 = arith.constant 0 : i32
    %c0_i32_2 = arith.constant 0 : i32
    return %c0_i32, %c0_i32_0, %c0_i32_1 : i32, i32, i32
  }
  func.func @transform_2(%arg0: i32) -> (i32, i32) {
    %c0_i32 = arith.constant 0 : i32
    %c0_i32_0 = arith.constant 0 : i32
    %c0_i32_1 = arith.constant 0 : i32
    return %c0_i32, %c0_i32_0 : i32, i32
  }
  func.func @transform_3(%arg0: i32) -> (i32, i32) {
    %c0_i32 = arith.constant 0 : i32
    %c0_i32_0 = arith.constant 0 : i32
    %c0_i32_1 = arith.constant 0 : i32
    return %c0_i32, %c0_i32_0 : i32, i32
  }
  func.func @transform_4(%arg0: i32) -> (i32, i32) {
    %c0_i32 = arith.constant 0 : i32
    %c0_i32_0 = arith.constant 0 : i32
    return %c0_i32, %arg0 : i32, i32
  }
  func.func @transform_5(%arg0: i32) -> (i32, i32, i32) {
    %c0_i32 = arith.constant 0 : i32
    %c0_i32_0 = arith.constant 0 : i32
    %c0_i32_1 = arith.constant 0 : i32
    return %arg0, %c0_i32, %c0_i32_0 : i32, i32, i32
  }
  func.func @transform_6(%arg0: i32) -> (i32, i32, i32) {
    %c0_i32 = arith.constant 0 : i32
    %c0_i32_0 = arith.constant 0 : i32
    %c0_i32_1 = arith.constant 0 : i32
    return %arg0, %c0_i32, %c0_i32_0 : i32, i32, i32
  }
}

module attributes {stable_mosaic.version = 11 : i64} {
  func.func @_conv_im2col_kernel(%arg0: i32, %arg1: memref<24x128xbf16, #tpu.memory_space<vmem>>, %arg2: memref<8x24xbf16, #tpu.memory_space<vmem>>, %arg3: memref<8x128xbf16, #tpu.memory_space<vmem>>, %arg4: memref<1x8x1xf32, #tpu.memory_space<vmem>>, %arg5: memref<1x8x1xf32, #tpu.memory_space<vmem>>) attributes {dimension_semantics = [#tpu.dimension_semantics<parallel>], iteration_bounds = array<i64: 1>, scalar_prefetch = 0 : i64, scratch_operands = 0 : i64, tpu.core_type = #tpu.core_type<tc>, window_params = [{transform_indices = @transform_0, window_bounds = array<i64: 24, 128>}, {pipeline_mode = #tpu.pipeline_mode<synchronous>, transform_indices = @transform_1, window_bounds = array<i64: 8, 24>}, {transform_indices = @transform_2, window_bounds = array<i64: 8, 128>}, {transform_indices = @transform_3, window_bounds = array<i64: 1, 8, 1>}, {transform_indices = @transform_4, window_bounds = array<i64: 1, 8, 1>}]} {
    %c0 = arith.constant 0 : index
    %c0_0 = arith.constant 0 : index
    %0 = vector.load %arg2[%c0, %c0_0] : memref<8x24xbf16, #tpu.memory_space<vmem>>, vector<8x24xbf16>
    %c0_1 = arith.constant 0 : index
    %c0_2 = arith.constant 0 : index
    %1 = vector.load %arg1[%c0_1, %c0_2] : memref<24x128xbf16, #tpu.memory_space<vmem>>, vector<24x128xbf16>
    %cst = arith.constant dense<0.000000e+00> : vector<8x128xf32>
    %2 = tpu.matmul %0, %1, %cst {dimension_numbers = #tpu.dot_dimension_numbers<[1], [0], [0], [1], [0, 0, 1, 1], [], []>} : vector<8x24xbf16>, vector<24x128xbf16>, vector<8x128xf32> -> vector<8x128xf32>
    %3 = arith.truncf %2 : vector<8x128xf32> to vector<8x128xbf16>
    %c0_3 = arith.constant 0 : index
    %c0_4 = arith.constant 0 : index
    %4 = vector.load %arg3[%c0_3, %c0_4] : memref<8x128xbf16, #tpu.memory_space<vmem>>, vector<8x128xbf16>
    tpu.vector_store %arg3[%c0_3, %c0_4], %3 {strides = array<i32>} : memref<8x128xbf16, #tpu.memory_space<vmem>>, vector<8x128xbf16>,
    %cst_5 = arith.constant dense<0.000000e+00> : vector<8xf32>
    %5 = vector.multi_reduction <add>, %2, %cst_5 [1] : vector<8x128xf32> to vector<8xf32>
    %6 = vector.shape_cast %5 : vector<8xf32> to vector<8x1xf32>
    %7 = vector.shape_cast %6 : vector<8x1xf32> to vector<1x8x1xf32>
    %c0_6 = arith.constant 0 : index
    %c0_7 = arith.constant 0 : index
    %c0_8 = arith.constant 0 : index
    %8 = vector.load %arg4[%c0_6, %c0_7, %c0_8] : memref<1x8x1xf32, #tpu.memory_space<vmem>>, vector<1x8x1xf32>
    tpu.vector_store %arg4[%c0_6, %c0_7, %c0_8], %7 {strides = array<i32>} : memref<1x8x1xf32, #tpu.memory_space<vmem>>, vector<1x8x1xf32>,
    %9 = arith.mulf %2, %2 : vector<8x128xf32>
    %cst_9 = arith.constant dense<0.000000e+00> : vector<8xf32>
    %10 = vector.multi_reduction <add>, %9, %cst_9 [1] : vector<8x128xf32> to vector<8xf32>
    %11 = vector.shape_cast %10 : vector<8xf32> to vector<8x1xf32>
    %12 = vector.shape_cast %11 : vector<8x1xf32> to vector<1x8x1xf32>
    %c0_10 = arith.constant 0 : index
    %c0_11 = arith.constant 0 : index
    %c0_12 = arith.constant 0 : index
    %13 = vector.load %arg5[%c0_10, %c0_11, %c0_12] : memref<1x8x1xf32, #tpu.memory_space<vmem>>, vector<1x8x1xf32>
    tpu.vector_store %arg5[%c0_10, %c0_11, %c0_12], %12 {strides = array<i32>} : memref<1x8x1xf32, #tpu.memory_space<vmem>>, vector<1x8x1xf32>,
    return
  }
  func.func @transform_0(%arg0: i32) -> (i32, i32) {
    %c0_i32 = arith.constant 0 : i32
    %c0_i32_0 = arith.constant 0 : i32
    return %c0_i32, %arg0 : i32, i32
  }
  func.func @transform_1(%arg0: i32) -> (i32, i32) {
    %c0_i32 = arith.constant 0 : i32
    %c0_i32_0 = arith.constant 0 : i32
    %c0_i32_1 = arith.constant 0 : i32
    return %c0_i32, %c0_i32_0 : i32, i32
  }
  func.func @transform_2(%arg0: i32) -> (i32, i32) {
    %c0_i32 = arith.constant 0 : i32
    %c0_i32_0 = arith.constant 0 : i32
    return %c0_i32, %arg0 : i32, i32
  }
  func.func @transform_3(%arg0: i32) -> (i32, i32, i32) {
    %c0_i32 = arith.constant 0 : i32
    %c0_i32_0 = arith.constant 0 : i32
    %c0_i32_1 = arith.constant 0 : i32
    return %arg0, %c0_i32, %c0_i32_0 : i32, i32, i32
  }
  func.func @transform_4(%arg0: i32) -> (i32, i32, i32) {
    %c0_i32 = arith.constant 0 : i32
    %c0_i32_0 = arith.constant 0 : i32
    %c0_i32_1 = arith.constant 0 : i32
    return %arg0, %c0_i32, %c0_i32_0 : i32, i32, i32
  }
}

module attributes {stable_mosaic.version = 11 : i64} {
  func.func @_epilogue_kernel(%arg0: i32, %arg1: memref<8x128xbf16, #tpu.memory_space<vmem>>, %arg2: memref<8x1xf32, #tpu.memory_space<vmem>>, %arg3: memref<8x1xf32, #tpu.memory_space<vmem>>, %arg4: memref<8x128xf32, #tpu.memory_space<vmem>>) attributes {dimension_semantics = [#tpu.dimension_semantics<parallel>], iteration_bounds = array<i64: 1>, scalar_prefetch = 0 : i64, scratch_operands = 0 : i64, tpu.core_type = #tpu.core_type<tc>, window_params = [{transform_indices = @transform_0, window_bounds = array<i64: 8, 128>}, {pipeline_mode = #tpu.pipeline_mode<synchronous>, transform_indices = @transform_1, window_bounds = array<i64: 8, 1>}, {pipeline_mode = #tpu.pipeline_mode<synchronous>, transform_indices = @transform_2, window_bounds = array<i64: 8, 1>}, {transform_indices = @transform_3, window_bounds = array<i64: 8, 128>}]} {
    %c0 = arith.constant 0 : index
    %c0_0 = arith.constant 0 : index
    %0 = vector.load %arg1[%c0, %c0_0] : memref<8x128xbf16, #tpu.memory_space<vmem>>, vector<8x128xbf16>
    %1 = arith.extf %0 : vector<8x128xbf16> to vector<8x128xf32>
    %c0_1 = arith.constant 0 : index
    %c0_2 = arith.constant 0 : index
    %2 = vector.load %arg2[%c0_1, %c0_2] : memref<8x1xf32, #tpu.memory_space<vmem>>, vector<8x1xf32>
    %3 = vector.broadcast %2 : vector<8x1xf32> to vector<8x128xf32>
    %4 = arith.mulf %1, %3 : vector<8x128xf32>
    %c0_3 = arith.constant 0 : index
    %c0_4 = arith.constant 0 : index
    %5 = vector.load %arg3[%c0_3, %c0_4] : memref<8x1xf32, #tpu.memory_space<vmem>>, vector<8x1xf32>
    %6 = vector.broadcast %5 : vector<8x1xf32> to vector<8x128xf32>
    %7 = arith.addf %4, %6 : vector<8x128xf32>
    %cst = arith.constant 5.000000e-01 : f32
    %8 = vector.broadcast %cst : f32 to vector<8x128xf32>
    %9 = arith.mulf %8, %7 : vector<8x128xf32>
    %cst_5 = arith.constant 0.707106769 : f32
    %10 = vector.broadcast %cst_5 : f32 to vector<8x128xf32>
    %11 = arith.mulf %7, %10 : vector<8x128xf32>
    %12 = math.erf %11 : vector<8x128xf32>
    %cst_6 = arith.constant 1.000000e+00 : f32
    %13 = vector.broadcast %cst_6 : f32 to vector<8x128xf32>
    %14 = arith.addf %13, %12 : vector<8x128xf32>
    %15 = arith.mulf %9, %14 : vector<8x128xf32>
    %c0_7 = arith.constant 0 : index
    %c0_8 = arith.constant 0 : index
    %16 = vector.load %arg4[%c0_7, %c0_8] : memref<8x128xf32, #tpu.memory_space<vmem>>, vector<8x128xf32>
    tpu.vector_store %arg4[%c0_7, %c0_8], %15 {strides = array<i32>} : memref<8x128xf32, #tpu.memory_space<vmem>>, vector<8x128xf32>,
    return
  }
  func.func @transform_0(%arg0: i32) -> (i32, i32) {
    %c0_i32 = arith.constant 0 : i32
    %c0_i32_0 = arith.constant 0 : i32
    return %c0_i32, %arg0 : i32, i32
  }
  func.func @transform_1(%arg0: i32) -> (i32, i32) {
    %c0_i32 = arith.constant 0 : i32
    %c0_i32_0 = arith.constant 0 : i32
    %c0_i32_1 = arith.constant 0 : i32
    return %c0_i32, %c0_i32_0 : i32, i32
  }
  func.func @transform_2(%arg0: i32) -> (i32, i32) {
    %c0_i32 = arith.constant 0 : i32
    %c0_i32_0 = arith.constant 0 : i32
    %c0_i32_1 = arith.constant 0 : i32
    return %c0_i32, %c0_i32_0 : i32, i32
  }
  func.func @transform_3(%arg0: i32) -> (i32, i32) {
    %c0_i32 = arith.constant 0 : i32
    %c0_i32_0 = arith.constant 0 : i32
    return %c0_i32, %arg0 : i32, i32
  }
}

</mosaic_0001>

<bundles_post_ra>
// kernel: conv1d_forward.3
= control target key start
LH: loop header
LB: loop body
LE: loop exit
PB: predicated region body
PF: predicated region fallthrough
CT: control target
= control target key end

     0   :  { %v283_v1 = vmov 0.0   ;;  %vm284_vm0 = vmmov 0   ;;  %vm65_vm1 = vcmask 1041408   ;;  %s285_s2 = smov 1   ;;  %vm61_vm2 = vcmask 31744   ;;  %s355_s0 = inlined_call_operand.vmem [shape: bf16[4,128], index: 0, kind: input, shape index: {}]   ;;  %s356_s2 = inlined_call_operand.vmem [shape: f32[4,1], index: 2, kind: input, shape index: {}]   ;;  %s357_s3 = inlined_call_operand.vmem [shape: f32[4,1], index: 3, kind: input, shape index: {}]   ;;  %s358_s1 = inlined_call_operand.vmem [shape: bf16[3,8,4], index: 1, kind: input, shape index: {}]   ;;  %s359_s4 = inlined_call_operand.vmem [shape: bf16[8,128], index: 4, kind: output, shape index: {0}]   ;;  %s360_s5 = inlined_call_operand.vmem [shape: f32[1,8,1], index: 5, kind: output, shape index: {1}]   ;;  %s361_s6 = inlined_call_operand.vmem [shape: f32[1,8,1], index: 6, kind: output, shape index: {2}]  }
   0x1   :  { %v21_v0 = vld [vmem:[%s355_s0] sm:$0x3]  ;;  %261 = vmatprep.subr.bf16.mxu0 %v283_v1  ;;  %255 = vmatprep.subr.bf16.mxu1 %v283_v1  ;;  %v243_v5 = vld [vmem:[%s358_s1 + $0x4] sm:$0xf]  ;;  %s286_s0 = smov 127   ;;  %v23_v6 = vlaneseq  ;;  %vm41_vm3 = vcmask 7168  }
   0x2   :  { %v22_v2 = vunpack.c.l.bf16 %v21_v0  ;;  %263 = vmatprep.mubr.msk.bf16.mxu0 %vm284_vm0, %v283_v1  ;;  %v244_v3 = vcombine.low %v21_v0, %v21_v0  ;;  %257 = vmatprep.mubr.msk.bf16.mxu1 %vm284_vm0, %v283_v1  ;;  %vm158_vm5 = vcmask 1039360   ;;  %v50_v19 = vld [vmem:[%s358_s1] sm:$0xf]  ;;  %v247_v22 = vld [vmem:[%s358_s1 + $0x8] sm:$0xf] }
   0x3   :  { %v24_v7 = vand.u32 127, %v23_v6 }
   0x4   :  { %38 = vrot.lane.b32.xlu0 %v22_v2, %s285_s2  ;;  %v67_v4 = vsel %vm65_vm1, %v244_v3, 0 }
   0x5   :  { %256 = vmatpush3.bf16.msra.mxu1 %v67_v4  ;;  %v29_v8 = vand.u32 15, %v24_v7  ;;  %vm222_vm7 = vcmp.lt.s32.totalorder %v24_v7, 32 }
   0x7   :  { %v43_v9 = vadd.s32 4294967295, %v29_v8  ;;  %v160_v10 = vadd.s32 1, %v29_v8 }
   0x8   :  { %155 = vrot.lane.b32.xlu0 %v22_v2, %s286_s0  ;;  %258 = vmatmul.mubr.msk.bf16.vlgmr.msra.gmra.mrb[0].mxu1 %vm61_vm2, %v243_v5 }
   0x9   :  { %vm44_vm4 = vcmp.ge.s32.totalorder %v43_v9, 0  ;;  %vm162_vm6 = vcmp.lt.s32.totalorder %v160_v10, 16 }
  0x76   :  { %v39_v11 = vpop.permute.xlu0 %38 }
  0x77   :  { %v42_v12 = vsel %vm41_vm3, 0.0, %v39_v11 }
  0x78   :  { %v49_v13 = vsel %vm44_vm4, %v42_v12, 0.0 }
  0x79   :  { %v51_v14 = vpack.c.bf16 %v49_v13, %v49_v13 }
  0x7a   :  { %v156_v15 = vpop.permute.xlu0 %155 }
  0x7b   :  { %v159_v16 = vsel %vm158_vm5, %v156_v15, 0.0  ;;  %v113_v17 = vsel %vm65_vm1, %v51_v14, 0 }
  0x7c   :  { %v166_v18 = vsel %vm162_vm6, %v159_v16, 0.0  ;;  %262 = vmatpush3.bf16.msra.mxu0 %v113_v17 }
  0x7d   :  { %v169_v20 = vpack.c.bf16 %v166_v18, %v166_v18  ;;  %267 = vmatprep.subr.bf16.mxu0 %v283_v1 }
  0x7f   :  { %264 = vmatmul.mubr.msk.bf16.vlgmr.msra.gmra.mrb[0].mxu0 %vm61_vm2, %v50_v19  ;;  %v174_v21 = vsel %vm65_vm1, %v169_v20, 0 }
  0x80   :  { %268 = vmatpush3.bf16.msra.mxu0 %v174_v21  ;;  %269 = vmatprep.mubr.msk.bf16.mxu0 %vm284_vm0, %v283_v1 }
  0x8b   :  { %270 = vmatmul.mubr.msk.bf16.vlgmr.msra.gmra.mrb[0].mxu0 %vm61_vm2, %v247_v22 }
  0xdb   :  { %v103_v23 = vpop.f32.mrb[0].mxu1 }
  0xdc   :  { %v259_v24 = vpop.f32.mrb[1].mxu1 }
  0xdd   :  { %v106_v25 = vpop.f32.mrb[2].mxu1 }
  0xde   :  { %v260_v26 = vpop.f32.mrb[3].mxu1 }
 0x15e   :  { %v210_v27 = vpop.f32.mrb[0].mxu0 }
 0x15f   :  { %v273_v28 = vadd.f32 %v210_v27, %v103_v23  ;;  %v271_v29 = vpop.f32.mrb[1].mxu0 }
 0x160   :  { %v213_v30 = vpop.f32.mrb[2].mxu0 }
 0x161   :  { %v217_v31 = vpack.c.bf16 %v273_v28, %v273_v28  ;;  %v272_v32 = vpop.f32.mrb[3].mxu0  ;;  %v223_v33 = vsel %vm222_vm7, %v273_v28, 0.0 }
 0x162   :  { %224 = vadd.xlane.f32.xlu1 %v223_v33  ;;  %v227_v34 = vmul.f32 %v223_v33, %v223_v33 }
 0x163   :  { %218 = vst [vmem:[%s359_s4] sm:$0xf] %v217_v31 }
 0x166   :  { %228 = vadd.xlane.f32.xlu1 %v227_v34 }
 0x1ef   :  { %v225_v35 = vpop.xlane.xlu1 %224 }
 0x1f0   :  { %226 = vst.msk [vmem:[%s360_s5] sm:$0xff] %vm41_vm3, %v225_v35 }
 0x1f3   :  { %v229_v36 = vpop.xlane.xlu1 %228 }
 0x1f4   :  { %230 = vst.msk [vmem:[%s361_s6] sm:$0xff] %vm41_vm3, %v229_v36 }

// kernel: conv1d_forward.4
= control target key start
LH: loop header
LB: loop body
LE: loop exit
PB: predicated region body
PF: predicated region fallthrough
CT: control target
= control target key end

     0   :  { %v116_v0 = vmov 0.0   ;;  %vm32_vm0 = vcmask 1043456   ;;  %vm117_vm1 = vmmov 0   ;;  %vm28_vm2 = vcmask 195584   ;;  %s161_s0 = inlined_call_operand.vmem [shape: bf16[24,128], index: 0, kind: input, shape index: {}]   ;;  %s162_s1 = inlined_call_operand.vmem [shape: bf16[8,24], index: 1, kind: input, shape index: {}]   ;;  %s163_s2 = inlined_call_operand.vmem [shape: bf16[8,128], index: 2, kind: output, shape index: {0}]   ;;  %s164_s3 = inlined_call_operand.vmem [shape: f32[1,8,1], index: 3, kind: output, shape index: {1}]   ;;  %s165_s4 = inlined_call_operand.vmem [shape: f32[1,8,1], index: 4, kind: output, shape index: {2}]  }
   0x1   :  { %104 = vmatprep.subr.bf16.mxu0 %v116_v0  ;;  %v114_v1 = vld [vmem:[%s161_s0] sm:$0xff]   ;;  %108 = vmatprep.mubr.msk.bf16.mxu0 %vm117_vm1, %v116_v0  ;;  %v115_v2 = vld [vmem:[%s161_s0 + $0x8] ss:$0 sps:$4 sm:$0xff]   ;;  %vm80_vm3 = vcmask 7168  }
   0x2   :  { %105 = vmatpush3.bf16.msra.mxu0 %v114_v1  ;;  %v34_v3 = vsel %vm32_vm0, %v115_v2, 0  ;;  %v15_v4 = vld [vmem:[%s162_s1] sm:$0xf] }
   0x3   :  { %106 = vmatprep.subr.bf16.mxu0 %v116_v0 }
   0x6   :  { %107 = vmatpush3.bf16.msra.mxu0 %v34_v3 }
   0x9   :  { %109 = vmatmul.mubr.msk.bf16.vlgmr.msra.gmra.mrb[0].mxu0 %vm28_vm2, %v15_v4 }
  0xdc   :  { %v70_v5 = vpop.f32.mrb[0].mxu0 }
  0xdd   :  { %v76_v6 = vpack.c.bf16 %v70_v5, %v70_v5  ;;  %78 = vadd.xlane.f32.xlu0 %v70_v5  ;;  %v110_v7 = vpop.f32.mrb[1].mxu0  ;;  %v82_v10 = vmul.f32 %v70_v5, %v70_v5 }
  0xde   :  { %v73_v8 = vpop.f32.mrb[2].mxu0 }
  0xdf   :  { %77 = vst [vmem:[%s163_s2] sm:$0xf] %v76_v6  ;;  %v111_v9 = vpop.f32.mrb[3].mxu0 }
  0xe1   :  { %83 = vadd.xlane.f32.xlu0 %v82_v10 }
 0x16a   :  { %v79_v11 = vpop.xlane.xlu0 %78 }
 0x16b   :  { %81 = vst.msk [vmem:[%s164_s3] sm:$0xff] %vm80_vm3, %v79_v11 }
 0x16e   :  { %v84_v12 = vpop.xlane.xlu0 %83 }
 0x16f   :  { %85 = vst.msk [vmem:[%s165_s4] sm:$0xff] %vm80_vm3, %v84_v12 }

// kernel: conv1d_forward.5
= control target key start
LH: loop header
LB: loop body
LE: loop exit
PB: predicated region body
PF: predicated region fallthrough
CT: control target
= control target key end

     0   :  { %v44_v0 = vmov 0   ;;  %s77_s1 = inlined_call_operand.vmem [shape: f32[8,1], index: 1, kind: input, shape index: {}]   ;;  %s78_s2 = inlined_call_operand.vmem [shape: f32[8,1], index: 2, kind: input, shape index: {}]   ;;  %s79_s0 = inlined_call_operand.vmem [shape: bf16[8,128], index: 0, kind: input, shape index: {}]   ;;  %s80_s3 = inlined_call_operand.vmem [shape: f32[8,128], index: 3, kind: output, shape index: {}]  }
   0x1   :  { %41 = vset.pattern.permute.xlu0 %v44_v0  ;;  %v16_v1 = vld [vmem:[%s77_s1] sm:$0xff] }
   0x2   :  { %19 = vperm.xlu0 %41, %v16_v1   ;;  %v23_v2 = vld [vmem:[%s78_s2] sm:$0xff] }
   0x3   :  { %v14_v3 = vld [vmem:[%s79_s0] sm:$0xf] }
   0x4   :  { %v15_v4 = vunpack.c.l.bf16 %v14_v3 }
   0x6   :  { %26 = vperm.xlu0 %41, %v23_v2  }
  0x81   :  { %v20_v5 = vpop.permute.xlu0 %19 }
  0x82   :  { %v22_v6 = vmul.f32 %v20_v5, %v15_v4 }
  0x85   :  { %v27_v7 = vpop.permute.xlu0 %26 }
  0x86   :  { %v29_v8 = vadd.f32 %v27_v7, %v22_v6 }
  0x88   :  { %v31_v9 = vmul.f32 0.70710677, %v29_v8  ;;  %v30_v11 = vmul.f32 0.5, %v29_v8 }
  0x8a   :  { %42 = verf.f32 %v31_v9 }
  0x94   :  { %v43_v10 = vpop.eup %42 }
  0x95   :  { %v33_v12 = vadd.f32 1.0, %v43_v10 }
  0x97   :  { %v34_v13 = vmul.f32 %v33_v12, %v30_v11 }
  0x99   :  { %35 = vst [vmem:[%s80_s3] sm:$0xff] %v34_v13 }

</bundles_post_ra>
